<compile_context>
chip_gen: v7x
topology: tpu7x:2x2x1
jax: 0.10.0
libtpu: 0.0.40
codegen_flags: <defaults>
</compile_context>

<pallas_src>
import jax
import jax.numpy as jnp
from jax.experimental import pallas as pl
from jax.experimental.pallas import tpu as pltpu


def _sage_kernel(adj_ref, xk_ref, xi_ref, w1_ref, w2_ref, o_ref,
                 neigh_acc, deg_acc):
    k = pl.program_id(1)

    @pl.when(k == 0)
    def _init():
        neigh_acc[...] = jnp.zeros_like(neigh_acc)
        deg_acc[...] = jnp.zeros_like(deg_acc)

    adj = adj_ref[...]                                       # (blk, blk)
    # Accumulate adj @ x over kv tiles (MXU) and row degrees (XLU lane reduce).
    neigh_acc[...] += jnp.dot(adj, xk_ref[...],
                              preferred_element_type=jnp.float32)
    deg_acc[...] += jnp.sum(adj, axis=1, keepdims=True)

    @pl.when(k == pl.num_programs(1) - 1)
    def _finalize():
        inv = pl.reciprocal(deg_acc[...] + 1.0, approx=True)  # (blk, 1) on EUP
        neigh = neigh_acc[...] * inv
        out = jnp.dot(xi_ref[...], w1_ref[...],
                      preferred_element_type=jnp.float32)
        out = out + jnp.dot(neigh, w2_ref[...],
                            preferred_element_type=jnp.float32)
        o_ref[...] = jnp.maximum(out, 0.0).astype(o_ref.dtype)   # ReLU


def _round_up(n, m):
    return (n + m - 1) // m * m


def sage_conv_relu(x, adj, W, *, block=256):
    """relu(SageConv(x, adj)) with dense 2D adjacency. W: (2*Fin, Fout)."""
    N, Fin = x.shape
    Fout = W.shape[1]
    assert W.shape == (2 * Fin, Fout)

    blk = min(block, _round_up(N, 128))       # tile edge: multiple of 128
    Np = _round_up(N, blk)
    Fin_p = _round_up(Fin, 128)
    Fout_p = _round_up(Fout, 128)

    # Zero-padding keeps semantics: padded adj rows have degree 0 (-> /1),
    # padded feature columns / output columns are zero and sliced off.
    xp = jnp.zeros((Np, Fin_p), jnp.float32).at[:N, :Fin].set(x)
    adjp = jnp.zeros((Np, Np), jnp.float32).at[:N, :N].set(adj)
    w1 = jnp.zeros((Fin_p, Fout_p), jnp.float32).at[:Fin, :Fout].set(W[:Fin])
    w2 = jnp.zeros((Fin_p, Fout_p), jnp.float32).at[:Fin, :Fout].set(W[Fin:])

    grid = (Np // blk, Np // blk)

    out = pl.pallas_call(
        _sage_kernel,
        out_shape=jax.ShapeDtypeStruct((Np, Fout_p), jnp.float32),
        grid_spec=pltpu.PrefetchScalarGridSpec(
            num_scalar_prefetch=0,
            grid=grid,
            in_specs=[
                pl.BlockSpec((blk, blk), lambda i, k: (i, k)),        # adj[i, k]
                pl.BlockSpec((blk, Fin_p), lambda i, k: (k, 0)),      # x (neighbor rows)
                pl.BlockSpec((blk, Fin_p), lambda i, k: (i, 0)),      # x (self rows)
                pl.BlockSpec((Fin_p, Fout_p), lambda i, k: (0, 0)),   # W1 resident
                pl.BlockSpec((Fin_p, Fout_p), lambda i, k: (0, 0)),   # W2 resident
            ],
            out_specs=pl.BlockSpec((blk, Fout_p), lambda i, k: (i, 0)),
            scratch_shapes=[
                pltpu.VMEM((blk, Fin_p), jnp.float32),   # neighbor-sum accumulator
                pltpu.VMEM((blk, 1), jnp.float32),       # degree accumulator
            ],
        ),
        compiler_params=pltpu.CompilerParams(
            dimension_semantics=("parallel", "arbitrary")),
    )(adjp, xp, xp, w1, w2)

    return out[:N, :Fout]


def sage_en_forward(x, adj, W, *, dropout=0.5, training=False, block=256):
    """Sage_En.forward: relu(SageConv(x, adj)), then dropout (no-op at inference)."""
    del dropout, training  # TODO(synk): training-mode dropout not implemented.
    if adj.ndim == 3:      # batched dense adjacency (torch.bmm branch)
        return jnp.stack([sage_conv_relu(x[b], adj[b], W, block=block)
                          for b in range(adj.shape[0])])
    return sage_conv_relu(x, adj, W, block=block)


def _ref_forward(x, adj, W):
    deg = jnp.sum(adj, axis=1, keepdims=True)
    neigh = (adj @ x) / (deg + 1.0)
    data = jnp.concatenate([x, neigh], axis=-1)
    return jnp.maximum(data @ W, 0.0)


if __name__ == "__main__":
    # Small shapes consistent with the module: N nodes, nfeat -> nembed.
    N, nfeat, nembed = 8, 16, 32
    dropout = 0.5

    key = jax.random.PRNGKey(0)
    k_x, k_adj, k_w = jax.random.split(key, 3)

    x = jax.random.normal(k_x, (N, nfeat), dtype=jnp.float32)
    adj = (jax.random.uniform(k_adj, (N, N)) > 0.5).astype(jnp.float32)
    adj = jnp.maximum(adj, jnp.eye(N, dtype=jnp.float32))  # self-loops
    # proj weight: nn.init.normal_; stored transposed as (2*nfeat, nembed), no bias.
    W = jax.random.normal(k_w, (2 * nfeat, nembed), dtype=jnp.float32)

    out = sage_en_forward(x, adj, W, dropout=dropout, training=False)
    jax.block_until_ready(out)

    ref = _ref_forward(x, adj, W)
    assert out.shape == (N, nembed)
    assert jnp.allclose(out, ref, atol=1e-2, rtol=1e-2), \
        float(jnp.max(jnp.abs(out - ref)))

    # Second check with multiple row/kv tiles to exercise the reduction path.
    N2, f2, e2 = 300, 48, 40
    k_x2, k_adj2, k_w2 = jax.random.split(jax.random.PRNGKey(1), 3)
    x2 = jax.random.normal(k_x2, (N2, f2), dtype=jnp.float32)
    adj2 = (jax.random.uniform(k_adj2, (N2, N2)) > 0.9).astype(jnp.float32)
    adj2 = jnp.maximum(adj2, jnp.eye(N2, dtype=jnp.float32))
    W2 = jax.random.normal(k_w2, (2 * f2, e2), dtype=jnp.float32)

    out2 = sage_en_forward(x2, adj2, W2, block=128)   # grid = (3, 3)
    jax.block_until_ready(out2)
    ref2 = _ref_forward(x2, adj2, W2)
    assert out2.shape == (N2, e2)
    assert jnp.allclose(out2, ref2, atol=5e-2, rtol=5e-2), \
        float(jnp.max(jnp.abs(out2 - ref2)))

    print("KERNEL_OK")
</pallas_src>

<mosaic_0001>
module attributes {stable_mosaic.version = 11 : i64} {
  func.func @_sage_kernel(%arg0: i32, %arg1: i32, %arg2: memref<128x128xf32, #tpu.memory_space<vmem>>, %arg3: memref<128x128xf32, #tpu.memory_space<vmem>>, %arg4: memref<128x128xf32, #tpu.memory_space<vmem>>, %arg5: memref<128x128xf32, #tpu.memory_space<vmem>>, %arg6: memref<128x128xf32, #tpu.memory_space<vmem>>, %arg7: memref<128x128xf32, #tpu.memory_space<vmem>>, %arg8: memref<128x128xf32, #tpu.memory_space<vmem>>, %arg9: memref<128x1xf32, #tpu.memory_space<vmem>>) attributes {dimension_semantics = [#tpu.dimension_semantics<parallel>, #tpu.dimension_semantics<arbitrary>], iteration_bounds = array<i64: 1, 1>, scalar_prefetch = 0 : i64, scratch_operands = 2 : i64, tpu.core_type = #tpu.core_type<tc>, window_params = [{transform_indices = @transform_0, window_bounds = array<i64: 128, 128>}, {transform_indices = @transform_1, window_bounds = array<i64: 128, 128>}, {transform_indices = @transform_2, window_bounds = array<i64: 128, 128>}, {pipeline_mode = #tpu.pipeline_mode<synchronous>, transform_indices = @transform_3, window_bounds = array<i64: 128, 128>}, {pipeline_mode = #tpu.pipeline_mode<synchronous>, transform_indices = @transform_4, window_bounds = array<i64: 128, 128>}, {transform_indices = @transform_5, window_bounds = array<i64: 128, 128>}]} {
    %c0_i32 = arith.constant 0 : i32
    %0 = arith.cmpi eq, %arg1, %c0_i32 : i32
    %1 = arith.extui %0 : i1 to i32
    %c0_i32_0 = arith.constant 0 : i32
    %2 = arith.cmpi ne, %1, %c0_i32_0 : i32
    scf.if %2 {
      %cst_15 = arith.constant 0.000000e+00 : f32
      %17 = vector.broadcast %cst_15 : f32 to vector<128x128xf32>
      %c0_16 = arith.constant 0 : index
      %c0_17 = arith.constant 0 : index
      %18 = vector.load %arg8[%c0_16, %c0_17] : memref<128x128xf32, #tpu.memory_space<vmem>>, vector<128x128xf32>
      tpu.vector_store %arg8[%c0_16, %c0_17], %17 {strides = array<i32>} : memref<128x128xf32, #tpu.memory_space<vmem>>, vector<128x128xf32>,
      %cst_18 = arith.constant 0.000000e+00 : f32
      %19 = vector.broadcast %cst_18 : f32 to vector<128x1xf32>
      %c0_19 = arith.constant 0 : index
      %c0_20 = arith.constant 0 : index
      %20 = vector.load %arg9[%c0_19, %c0_20] : memref<128x1xf32, #tpu.memory_space<vmem>>, vector<128x1xf32>
      tpu.vector_store %arg9[%c0_19, %c0_20], %19 {strides = array<i32>} : memref<128x1xf32, #tpu.memory_space<vmem>>, vector<128x1xf32>,
    } else {
    }
    %c0 = arith.constant 0 : index
    %c0_1 = arith.constant 0 : index
    %3 = vector.load %arg2[%c0, %c0_1] : memref<128x128xf32, #tpu.memory_space<vmem>>, vector<128x128xf32>
    %c0_2 = arith.constant 0 : index
    %c0_3 = arith.constant 0 : index
    %4 = vector.load %arg8[%c0_2, %c0_3] : memref<128x128xf32, #tpu.memory_space<vmem>>, vector<128x128xf32>
    %c0_4 = arith.constant 0 : index
    %c0_5 = arith.constant 0 : index
    %5 = vector.load %arg3[%c0_4, %c0_5] : memref<128x128xf32, #tpu.memory_space<vmem>>, vector<128x128xf32>
    %cst = arith.constant dense<0.000000e+00> : vector<128x128xf32>
    %6 = tpu.matmul %3, %5, %cst {dimension_numbers = #tpu.dot_dimension_numbers<[1], [0], [0], [1], [0, 0, 1, 1], [], []>} : vector<128x128xf32>, vector<128x128xf32>, vector<128x128xf32> -> vector<128x128xf32>
    %7 = arith.addf %4, %6 : vector<128x128xf32>
    %c0_6 = arith.constant 0 : index
    %c0_7 = arith.constant 0 : index
    %8 = vector.load %arg8[%c0_6, %c0_7] : memref<128x128xf32, #tpu.memory_space<vmem>>, vector<128x128xf32>
    tpu.vector_store %arg8[%c0_6, %c0_7], %7 {strides = array<i32>} : memref<128x128xf32, #tpu.memory_space<vmem>>, vector<128x128xf32>,
    %c0_8 = arith.constant 0 : index
    %c0_9 = arith.constant 0 : index
    %9 = vector.load %arg9[%c0_8, %c0_9] : memref<128x1xf32, #tpu.memory_space<vmem>>, vector<128x1xf32>
    %cst_10 = arith.constant dense<0.000000e+00> : vector<128xf32>
    %10 = vector.multi_reduction <add>, %3, %cst_10 [1] : vector<128x128xf32> to vector<128xf32>
    %11 = vector.shape_cast %10 : vector<128xf32> to vector<128x1xf32>
    %12 = arith.addf %9, %11 : vector<128x1xf32>
    %c0_11 = arith.constant 0 : index
    %c0_12 = arith.constant 0 : index
    %13 = vector.load %arg9[%c0_11, %c0_12] : memref<128x1xf32, #tpu.memory_space<vmem>>, vector<128x1xf32>
    tpu.vector_store %arg9[%c0_11, %c0_12], %12 {strides = array<i32>} : memref<128x1xf32, #tpu.memory_space<vmem>>, vector<128x1xf32>,
    %c0_i32_13 = arith.constant 0 : i32
    %14 = arith.cmpi eq, %arg1, %c0_i32_13 : i32
    %15 = arith.extui %14 : i1 to i32
    %c0_i32_14 = arith.constant 0 : i32
    %16 = arith.cmpi ne, %15, %c0_i32_14 : i32
    scf.if %16 {
      %c0_15 = arith.constant 0 : index
      %c0_16 = arith.constant 0 : index
      %17 = vector.load %arg9[%c0_15, %c0_16] : memref<128x1xf32, #tpu.memory_space<vmem>>, vector<128x1xf32>
      %cst_17 = arith.constant 1.000000e+00 : f32
      %18 = vector.broadcast %cst_17 : f32 to vector<128x1xf32>
      %19 = arith.addf %17, %18 : vector<128x1xf32>
      %20 = tpu.reciprocal %19 {approx = true} : vector<128x1xf32> -> vector<128x1xf32>
      %c0_18 = arith.constant 0 : index
      %c0_19 = arith.constant 0 : index
      %21 = vector.load %arg8[%c0_18, %c0_19] : memref<128x128xf32, #tpu.memory_space<vmem>>, vector<128x128xf32>
      %22 = vector.broadcast %20 : vector<128x1xf32> to vector<128x128xf32>
      %23 = arith.mulf %21, %22 : vector<128x128xf32>
      %c0_20 = arith.constant 0 : index
      %c0_21 = arith.constant 0 : index
      %24 = vector.load %arg4[%c0_20, %c0_21] : memref<128x128xf32, #tpu.memory_space<vmem>>, vector<128x128xf32>
      %c0_22 = arith.constant 0 : index
      %c0_23 = arith.constant 0 : index
      %25 = vector.load %arg5[%c0_22, %c0_23] : memref<128x128xf32, #tpu.memory_space<vmem>>, vector<128x128xf32>
      %cst_24 = arith.constant dense<0.000000e+00> : vector<128x128xf32>
      %26 = tpu.matmul %24, %25, %cst_24 {dimension_numbers = #tpu.dot_dimension_numbers<[1], [0], [0], [1], [0, 0, 1, 1], [], []>} : vector<128x128xf32>, vector<128x128xf32>, vector<128x128xf32> -> vector<128x128xf32>
      %c0_25 = arith.constant 0 : index
      %c0_26 = arith.constant 0 : index
      %27 = vector.load %arg6[%c0_25, %c0_26] : memref<128x128xf32, #tpu.memory_space<vmem>>, vector<128x128xf32>
      %cst_27 = arith.constant dense<0.000000e+00> : vector<128x128xf32>
      %28 = tpu.matmul %23, %27, %cst_27 {dimension_numbers = #tpu.dot_dimension_numbers<[1], [0], [0], [1], [0, 0, 1, 1], [], []>} : vector<128x128xf32>, vector<128x128xf32>, vector<128x128xf32> -> vector<128x128xf32>
      %29 = arith.addf %26, %28 : vector<128x128xf32>
      %cst_28 = arith.constant 0.000000e+00 : f32
      %30 = vector.broadcast %cst_28 : f32 to vector<128x128xf32>
      %31 = arith.maximumf %29, %30 : vector<128x128xf32>
      %c0_29 = arith.constant 0 : index
      %c0_30 = arith.constant 0 : index
      %32 = vector.load %arg7[%c0_29, %c0_30] : memref<128x128xf32, #tpu.memory_space<vmem>>, vector<128x128xf32>
      tpu.vector_store %arg7[%c0_29, %c0_30], %31 {strides = array<i32>} : memref<128x128xf32, #tpu.memory_space<vmem>>, vector<128x128xf32>,
    } else {
    }
    return
  }
  func.func @transform_0(%arg0: i32, %arg1: i32) -> (i32, i32) {
    %c0_i32 = arith.constant 0 : i32
    return %arg0, %arg1 : i32, i32
  }
  func.func @transform_1(%arg0: i32, %arg1: i32) -> (i32, i32) {
    %c0_i32 = arith.constant 0 : i32
    %c0_i32_0 = arith.constant 0 : i32
    return %arg1, %c0_i32 : i32, i32
  }
  func.func @transform_2(%arg0: i32, %arg1: i32) -> (i32, i32) {
    %c0_i32 = arith.constant 0 : i32
    %c0_i32_0 = arith.constant 0 : i32
    return %arg0, %c0_i32 : i32, i32
  }
  func.func @transform_3(%arg0: i32, %arg1: i32) -> (i32, i32) {
    %c0_i32 = arith.constant 0 : i32
    %c0_i32_0 = arith.constant 0 : i32
    %c0_i32_1 = arith.constant 0 : i32
    return %c0_i32, %c0_i32_0 : i32, i32
  }
  func.func @transform_4(%arg0: i32, %arg1: i32) -> (i32, i32) {
    %c0_i32 = arith.constant 0 : i32
    %c0_i32_0 = arith.constant 0 : i32
    %c0_i32_1 = arith.constant 0 : i32
    return %c0_i32, %c0_i32_0 : i32, i32
  }
  func.func @transform_5(%arg0: i32, %arg1: i32) -> (i32, i32) {
    %c0_i32 = arith.constant 0 : i32
    %c0_i32_0 = arith.constant 0 : i32
    return %arg0, %c0_i32 : i32, i32
  }
}

</mosaic_0001>

<bundles_post_ra>
// kernel: tpu_custom_call.1
= control target key start
LH: loop header
LB: loop body
LE: loop exit
PB: predicated region body
PF: predicated region fallthrough
CT: control target
= control target key end

     0   :  { %10 = vsyncpa [#allocation5], 0  ;;  %s1804_s0 = inlined_call_operand.hbm [shape: f32[128,128], index: 0, kind: input, shape index: {}]   ;;  %s1805_s1 = inlined_call_operand.hbm [shape: f32[128,128], index: 1, kind: input, shape index: {}]   ;;  %s1806_s2 = inlined_call_operand.hbm [shape: f32[128,128], index: 2, kind: input, shape index: {}]   ;;  %s1807_s3 = inlined_call_operand.hbm [shape: f32[128,128], index: 3, kind: input, shape index: {}]   ;;  %s1808_s4 = inlined_call_operand.hbm [shape: f32[128,128], index: 4, kind: input, shape index: {}]   ;;  %s1809_s5 = inlined_call_operand.hbm [shape: f32[128,128], index: 5, kind: output, shape index: {}]  }
   0x1   :  { %11 = vsyncpa [#allocation8], 0 }
   0x2   :  { %12 = vsyncpa [#allocation11], 0 }
   0x3   :  { %13 = vsyncpa [#allocation6], 0  ;;  %s1560_s18 = smov [#allocation7]   ;;  %s1561_s20 = smov [#allocation10]  }
   0x4   :  { %s31_s19 = sshll.u32 %s1560_s18, 4  ;;  %s55_s21 = sshll.u32 %s1561_s20, 4  ;;  %s32_s19 = int_to_ptr.vmem [resolvable:$true] %s31_s19  ;;  %s1600_s21 = int_to_ptr.vmem [resolvable:$true] %s55_s21 }
   0x5   :  { %s1420_s24 = scalar_lea.hbm %s1805_s1, 2048 }
   0x6   :  { %p1421_p0 = scmp.ne.s32.totalorder %s1805_s1, %s1420_s24  ;;  %p1424_p1 = scmp.lt.u32.totalorder %s1420_s24, %s1805_s1 }
   0x8   :  { %p1426_p2 = pnand %p1424_p1, %p1421_p0 }
   0xa   :  { %1429 = shalt.err (!%p1426_p2)
}
   0xb   :  { %s1430_s29 = scalar_lea.vmem %s32_s19, 2048  ;;  %p1435_p4 = scmp.lt.s32.totalorder %s32_s19, %s32_s19 }
   0xc   :  { %p1431_p3 = scmp.ne.s32.totalorder %s32_s19, %s1430_s29  ;;  %p1436_p5 = scmp.lt.s32.totalorder %s1430_s29, %s1430_s29 }
   0xe   :  { %p1437_p6 = por %p1436_p5, %p1435_p4 }
  0x10   :  { %p1438_p7 = pnand %p1437_p6, %p1431_p3 }
  0x12   :  { %1441 = shalt.err (!%p1438_p7)
}
  0x13   :  { %s1562_s30 = smov 128   ;;  %s1563_s6 = smov 8  }
  0x14   :  { %37 = dma.hbm_to_vmem [thread:$0]  %s1805_s1, 2048, %s32_s19, [#allocation8], %s1562_s30, %s1562_s30, %s1563_s6  }
  0x15   :  { %s1442_s11 = scalar_lea.hbm %s1807_s3, 2048 }
  0x16   :  { %p1443_p8 = scmp.ne.s32.totalorder %s1807_s3, %s1442_s11  ;;  %p1446_p9 = scmp.lt.u32.totalorder %s1442_s11, %s1807_s3 }
  0x18   :  { %p1448_p10 = pnand %p1446_p9, %p1443_p8 }
  0x1a   :  { %1451 = shalt.err (!%p1448_p10)
}
  0x1b   :  { %s1452_s16 = scalar_lea.vmem %s1600_s21, 2048  ;;  %p1457_p12 = scmp.lt.s32.totalorder %s1600_s21, %s1600_s21 }
  0x1c   :  { %p1453_p11 = scmp.ne.s32.totalorder %s1600_s21, %s1452_s16  ;;  %p1458_p13 = scmp.lt.s32.totalorder %s1452_s16, %s1452_s16 }
  0x1e   :  { %p1459_p0 = por %p1458_p13, %p1457_p12 }
  0x20   :  { %p1460_p1 = pnand %p1459_p0, %p1453_p11 }
  0x22   :  { %1463 = shalt.err (!%p1460_p1)
}
  0x23   :  { %61 = dma.hbm_to_vmem [thread:$0]  %s1807_s3, 2048, %s1600_s21, [#allocation11], %s1562_s30, %s1562_s30, %s1563_s6  }
  0x24   :  { %s1564_s18 = smov [#allocation4]   ;;  %s1565_s20 = smov [#allocation9]  }
  0x25   :  { %s19_s19 = sshll.u32 %s1564_s18, 4  ;;  %s43_s22 = sshll.u32 %s1565_s20, 4  ;;  %s20_s19 = int_to_ptr.vmem [resolvable:$true] %s19_s19  ;;  %s1637_s22 = int_to_ptr.vmem [resolvable:$true] %s43_s22 }
  0x26   :  { %s1464_s25 = scalar_lea.hbm %s1804_s0, 2048 }
  0x27   :  { %p1465_p2 = scmp.ne.s32.totalorder %s1804_s0, %s1464_s25  ;;  %p1468_p3 = scmp.lt.u32.totalorder %s1464_s25, %s1804_s0 }
  0x29   :  { %p1470_p4 = pnand %p1468_p3, %p1465_p2 }
  0x2b   :  { %1473 = shalt.err (!%p1470_p4)
}
  0x2c   :  { %s1474_s3 = scalar_lea.vmem %s20_s19, 2048  ;;  %p1479_p6 = scmp.lt.s32.totalorder %s20_s19, %s20_s19 }
  0x2d   :  { %p1475_p5 = scmp.ne.s32.totalorder %s20_s19, %s1474_s3  ;;  %p1480_p7 = scmp.lt.s32.totalorder %s1474_s3, %s1474_s3 }
  0x2f   :  { %p1481_p8 = por %p1480_p7, %p1479_p6 }
  0x31   :  { %p1482_p9 = pnand %p1481_p8, %p1475_p5 }
  0x33   :  { %1485 = shalt.err (!%p1482_p9)
}
  0x34   :  { %25 = dma.hbm_to_vmem [thread:$0]  %s1804_s0, 2048, %s20_s19, [#allocation5], %s1562_s30, %s1562_s30, %s1563_s6  }
  0x35   :  { %s1486_s10 = scalar_lea.hbm %s1806_s2, 2048 }
  0x36   :  { %p1487_p10 = scmp.ne.s32.totalorder %s1806_s2, %s1486_s10  ;;  %p1490_p11 = scmp.lt.u32.totalorder %s1486_s10, %s1806_s2 }
  0x38   :  { %p1492_p12 = pnand %p1490_p11, %p1487_p10 }
  0x3a   :  { %1495 = shalt.err (!%p1492_p12)
}
  0x3b   :  { %s1496_s15 = scalar_lea.vmem %s1637_s22, 2048  ;;  %p1501_p0 = scmp.lt.s32.totalorder %s1637_s22, %s1637_s22 }
  0x3c   :  { %p1497_p13 = scmp.ne.s32.totalorder %s1637_s22, %s1496_s15  ;;  %p1502_p1 = scmp.lt.s32.totalorder %s1496_s15, %s1496_s15 }
  0x3e   :  { %p1503_p2 = por %p1502_p1, %p1501_p0 }
  0x40   :  { %p1504_p3 = pnand %p1503_p2, %p1497_p13 }
  0x42   :  { %1507 = shalt.err (!%p1504_p3)
}
  0x43   :  { %49 = dma.hbm_to_vmem [thread:$0]  %s1806_s2, 2048, %s1637_s22, [#allocation8], %s1562_s30, %s1562_s30, %s1563_s6  }
  0x44   :  { %s1566_s1 = smov [#allocation12]   ;;  %s1508_s20 = scalar_lea.hbm %s1808_s4, 2048 }
  0x45   :  { %s67_s17 = sshll.u32 %s1566_s1, 4  ;;  %p1509_p4 = scmp.ne.s32.totalorder %s1808_s4, %s1508_s20  ;;  %s68_s17 = int_to_ptr.vmem [resolvable:$true] %s67_s17 }
  0x46   :  { %p1512_p5 = scmp.lt.u32.totalorder %s1508_s20, %s1808_s4 }
  0x48   :  { %p1514_p6 = pnand %p1512_p5, %p1509_p4 }
  0x4a   :  { %1517 = shalt.err (!%p1514_p6)
}
  0x4b   :  { %s1518_s27 = scalar_lea.vmem %s68_s17, 2048  ;;  %p1523_p8 = scmp.lt.s32.totalorder %s68_s17, %s68_s17 }
  0x4c   :  { %p1519_p7 = scmp.ne.s32.totalorder %s68_s17, %s1518_s27  ;;  %p1524_p9 = scmp.lt.s32.totalorder %s1518_s27, %s1518_s27 }
  0x4e   :  { %p1525_p10 = por %p1524_p9, %p1523_p8 }
  0x50   :  { %p1526_p11 = pnand %p1525_p10, %p1519_p7 }
  0x52   :  { %1529 = shalt.err (!%p1526_p11)
}
  0x53   :  { %73 = dma.hbm_to_vmem [thread:$0]  %s1808_s4, 2048, %s68_s17, [#allocation11], %s1562_s30, %s1562_s30, %s1563_s6  }
  0x54   :  { %1552 = dma.done.wait [#allocation5], 2048  }
  0x55   :  { %1553 = vsyncadd [#allocation5], 4294965248 }
  0x56   :  { %1554 = dma.done.wait [#allocation8], 4096  }
  0x57   :  { %1555 = vsyncadd [#allocation8], 4294963200 }
  0x58   :  { %1556 = dma.done.wait [#allocation11], 4096  }
  0x59   :  { %1557 = vsyncadd [#allocation11], 4294963200  ;;  %vm109_vm0 = vcmask 7168   ;;  %v1567_v0 = vmov 0.0   ;;  %v1705_v1 = vld [vmem:[#allocation4 + $0x10] sm:$0xff]  ;;  %v126_v2 = vld [vmem:[#allocation4] sm:$0xff] }
  0x5a   :  { %112 = vst.msk [vmem:[#allocation3 + $0x10] sm:$0xff] %vm109_vm0, %v1567_v0  ;;  %110 = vst.msk [vmem:[#allocation3] sm:$0xff] %vm109_vm0, %v1567_v0  ;;  %371 = vadd.xlane.f32.xlu1 %v1705_v1  ;;  %367 = vadd.xlane.f32.xlu0 %v126_v2  ;;  %v1708_v3 = vld [vmem:[#allocation4 + $0x18] sm:$0xff]  ;;  %v1710_v4 = vld [vmem:[#allocation4 + $0x8] sm:$0xff]  ;;  %v1568_v41 = vmov 0   ;;  %s1569_s4 = smov [#allocation13]  }
  0x5b   :  { %111 = vst.msk [vmem:[#allocation3 + $0x8] sm:$0xff] %vm109_vm0, %v1567_v0  ;;  %113 = vst.msk [vmem:[#allocation3 + $0x18] sm:$0xff] %vm109_vm0, %v1567_v0  ;;  %1112 = vmatprep.mubr.f32.mxu0 %v126_v2  ;;  %v1714_v5 = vld [vmem:[#allocation4 + $0x28] sm:$0xff]  ;;  %v158_v6 = vld [vmem:[#allocation7] sm:$0xff]  ;;  %1386 = vset.pattern.permute.xlu0 %v1568_v41  ;;  %s970_s28 = sshll.u32 %s1569_s4, 4  ;;  %s971_s28 = int_to_ptr.vmem [resolvable:$true] %s970_s28 }
  0x5c   :  { %114 = vst.msk [vmem:[#allocation3 + $0x20] sm:$0xff] %vm109_vm0, %v1567_v0  ;;  %115 = vst.msk [vmem:[#allocation3 + $0x28] sm:$0xff] %vm109_vm0, %v1567_v0  ;;  %v159_v7 = vld [vmem:[#allocation7 + $0x8] sm:$0xff]  ;;  %v1716_v8 = vld [vmem:[#allocation4 + $0x20] sm:$0xff]  ;;  %1387 = vset.pattern.permute.xlu1 %v1568_v41  ;;  %s1530_s29 = scalar_lea.vmem %s971_s28, 2048  ;;  %p1535_p13 = scmp.lt.s32.totalorder %s971_s28, %s971_s28 }
  0x5d   :  { %116 = vst.msk [vmem:[#allocation3 + $0x30] sm:$0xff] %vm109_vm0, %v1567_v0  ;;  %117 = vst.msk [vmem:[#allocation3 + $0x38] sm:$0xff] %vm109_vm0, %v1567_v0  ;;  %v1248_v9 = vpack.c.bf16 %v159_v7, %v158_v6  ;;  %v160_v10 = vld [vmem:[#allocation7 + $0x10] sm:$0xff]  ;;  %v161_v11 = vld [vmem:[#allocation7 + $0x18] sm:$0xff]  ;;  %p1531_p12 = scmp.ne.s32.totalorder %s971_s28, %s1530_s29  ;;  %p1536_p0 = scmp.lt.s32.totalorder %s1530_s29, %s1530_s29 }
  0x5e   :  { %118 = vst.msk [vmem:[#allocation3 + $0x40] sm:$0xff] %vm109_vm0, %v1567_v0  ;;  %119 = vst.msk [vmem:[#allocation3 + $0x48] sm:$0xff] %vm109_vm0, %v1567_v0  ;;  %373 = vadd.xlane.f32.xlu1 %v1708_v3  ;;  %369 = vadd.xlane.f32.xlu0 %v1710_v4  ;;  %v1252_v12 = vpack.c.bf16 %v161_v11, %v160_v10  ;;  %v162_v13 = vld [vmem:[#allocation7 + $0x20] sm:$0xff]  ;;  %v163_v14 = vld [vmem:[#allocation7 + $0x28] sm:$0xff] }
  0x5f   :  { %120 = vst.msk [vmem:[#allocation3 + $0x50] sm:$0xff] %vm109_vm0, %v1567_v0  ;;  %121 = vst.msk [vmem:[#allocation3 + $0x58] sm:$0xff] %vm109_vm0, %v1567_v0  ;;  %1249 = vmatprep.subr.bf16.mxu0 %v1248_v9  ;;  %v133_v15 = vld [vmem:[#allocation4 + $0x38] sm:$0xff]  ;;  %v132_v16 = vld [vmem:[#allocation4 + $0x30] sm:$0xff]  ;;  %v1256_v17 = vpack.c.bf16 %v163_v14, %v162_v13  ;;  %p1537_p1 = por %p1536_p0, %p1535_p13 }
  0x60   :  { %122 = vst.msk [vmem:[#allocation3 + $0x60] sm:$0xff] %vm109_vm0, %v1567_v0  ;;  %123 = vst.msk [vmem:[#allocation3 + $0x68] sm:$0xff] %vm109_vm0, %v1567_v0  ;;  %1251 = vmatpush3.bf16.msra.mxu0 %v1248_v9  ;;  %v164_v18 = vld [vmem:[#allocation7 + $0x30] sm:$0xff]  ;;  %v165_v19 = vld [vmem:[#allocation7 + $0x38] sm:$0xff] }
  0x61   :  { %124 = vst.msk [vmem:[#allocation3 + $0x70] sm:$0xff] %vm109_vm0, %v1567_v0  ;;  %125 = vst.msk [vmem:[#allocation3 + $0x78] sm:$0xff] %vm109_vm0, %v1567_v0  ;;  %1253 = vmatprep.subr.bf16.mxu0 %v1252_v12  ;;  %v135_v20 = vld [vmem:[#allocation4 + $0x48] sm:$0xff]  ;;  %v134_v21 = vld [vmem:[#allocation4 + $0x40] sm:$0xff]  ;;  %v1260_v22 = vpack.c.bf16 %v165_v19, %v164_v18  ;;  %p1538_p2 = pnand %p1537_p1, %p1531_p12 }
  0x62   :  { %377 = vadd.xlane.f32.xlu1 %v1714_v5  ;;  %375 = vadd.xlane.f32.xlu0 %v1716_v8  ;;  %v166_v23 = vld [vmem:[#allocation7 + $0x40] sm:$0xff]  ;;  %v167_v24 = vld [vmem:[#allocation7 + $0x48] sm:$0xff]  ;;  %v137_v25 = vld [vmem:[#allocation4 + $0x58] sm:$0xff] }
  0x63   :  { %v136_v26 = vld [vmem:[#allocation4 + $0x50] sm:$0xff]  ;;  %v1264_v27 = vpack.c.bf16 %v167_v24, %v166_v23  ;;  %v169_v29 = vld [vmem:[#allocation7 + $0x58] sm:$0xff]  ;;  %v139_v30 = vld [vmem:[#allocation4 + $0x68] sm:$0xff] }
  0x64   :  { %1255 = vmatpush3.bf16.msra.mxu0 %v1252_v12  ;;  %v168_v28 = vld [vmem:[#allocation7 + $0x50] sm:$0xff]  ;;  %v138_v31 = vld [vmem:[#allocation4 + $0x60] sm:$0xff]  ;;  %v171_v34 = vld [vmem:[#allocation7 + $0x68] sm:$0xff] }
  0x65   :  { %1257 = vmatprep.subr.bf16.mxu0 %v1256_v17  ;;  %v1268_v32 = vpack.c.bf16 %v169_v29, %v168_v28  ;;  %v170_v33 = vld [vmem:[#allocation7 + $0x60] sm:$0xff]  ;;  %v141_v35 = vld [vmem:[#allocation4 + $0x78] sm:$0xff]  ;;  %v140_v36 = vld [vmem:[#allocation4 + $0x70] sm:$0xff] }
  0x66   :  { %381 = vadd.xlane.f32.xlu1 %v133_v15  ;;  %379 = vadd.xlane.f32.xlu0 %v132_v16  ;;  %v1272_v37 = vpack.c.bf16 %v171_v34, %v170_v33  ;;  %v172_v38 = vld [vmem:[#allocation7 + $0x70] sm:$0xff]  ;;  %v173_v39 = vld [vmem:[#allocation7 + $0x78] sm:$0xff]  ;;  %v627_v42 = vld [vmem:[#allocation12] sm:$0xff] }
  0x67   :  { %v1276_v40 = vpack.c.bf16 %v173_v39, %v172_v38  ;;  %v628_v43 = vld [vmem:[#allocation12 + $0x8] sm:$0xff]  ;;  %v611_v44 = vld [vmem:[#allocation10] sm:$0xff]  ;;  %v629_v47 = vld [vmem:[#allocation12 + $0x10] sm:$0xff] }
  0x68   :  { %1259 = vmatpush3.bf16.msra.mxu0 %v1256_v17  ;;  %v1280_v45 = vpack.c.bf16 %v628_v43, %v627_v42  ;;  %v612_v46 = vld [vmem:[#allocation10 + $0x8] sm:$0xff]  ;;  %v630_v48 = vld [vmem:[#allocation12 + $0x18] sm:$0xff]  ;;  %v613_v51 = vld [vmem:[#allocation10 + $0x10] sm:$0xff] }
  0x69   :  { %1261 = vmatprep.subr.bf16.mxu0 %v1260_v22  ;;  %v1725_v49 = vpack.c.bf16 %v612_v46, %v611_v44  ;;  %v1284_v50 = vpack.c.bf16 %v630_v48, %v629_v47  ;;  %v614_v52 = vld [vmem:[#allocation10 + $0x18] sm:$0xff]  ;;  %v631_v53 = vld [vmem:[#allocation12 + $0x20] sm:$0xff]  ;;  %v632_v55 = vld [vmem:[#allocation12 + $0x28] sm:$0xff] }
  0x6a   :  { %385 = vadd.xlane.f32.xlu1 %v135_v20  ;;  %383 = vadd.xlane.f32.xlu0 %v134_v21  ;;  %v1727_v54 = vpack.c.bf16 %v614_v52, %v613_v51  ;;  %v615_v56 = vld [vmem:[#allocation10 + $0x20] sm:$0xff]  ;;  %v616_v57 = vld [vmem:[#allocation10 + $0x28] sm:$0xff]  ;;  %v1288_v58 = vpack.c.bf16 %v632_v55, %v631_v53  ;;  %v633_v60 = vld [vmem:[#allocation12 + $0x30] sm:$0xff] }
  0x6b   :  { %1281 = vmatprep.subr.bf16.mxu1 %v1280_v45  ;;  %v1732_v59 = vpack.c.bf16 %v616_v57, %v615_v56  ;;  %v634_v61 = vld [vmem:[#allocation12 + $0x38] sm:$0xff]  ;;  %v617_v62 = vld [vmem:[#allocation10 + $0x30] sm:$0xff]  ;;  %v635_v2 = vld [vmem:[#allocation12 + $0x40] sm:$0xff] }
  0x6c   :  { %1263 = vmatpush3.bf16.msra.mxu0 %v1260_v22  ;;  %1283 = vmatpush3.bf16.msra.mxu1 %v1280_v45  ;;  %v618_v63 = vld [vmem:[#allocation10 + $0x38] sm:$0xff]  ;;  %v1292_v0 = vpack.c.bf16 %v634_v61, %v633_v60  ;;  %v621_v10 = vld [vmem:[#allocation10 + $0x50] sm:$0xff]  ;;  %v639_v14 = vld [vmem:[#allocation12 + $0x60] sm:$0xff] }
  0x6d   :  { %1265 = vmatprep.subr.bf16.mxu0 %v1264_v27  ;;  %1285 = vmatprep.subr.bf16.mxu1 %v1284_v50  ;;  %v638_v9 = vld [vmem:[#allocation12 + $0x58] sm:$0xff]  ;;  %v624_v18 = vld [vmem:[#allocation10 + $0x68] sm:$0xff]  ;;  %v355_v33 = vld [vmem:[#allocation3 + $0x20] sm:$0xff] }
  0x6e   :  { %389 = vadd.xlane.f32.xlu1 %v137_v25  ;;  %387 = vadd.xlane.f32.xlu0 %v136_v26  ;;  %v622_v11 = vld [vmem:[#allocation10 + $0x58] sm:$0xff]  ;;  %v357_v39 = vld [vmem:[#allocation3 + $0x30] sm:$0xff]  ;;  %v360_v47 = vld [vmem:[#allocation3 + $0x48] sm:$0xff] }
  0x6f   :  { %v1744_v13 = vpack.c.bf16 %v622_v11, %v621_v10  ;;  %v358_v38 = vld [vmem:[#allocation3 + $0x38] sm:$0xff]  ;;  %v361_v61 = vld [vmem:[#allocation3 + $0x50] sm:$0xff] }
  0x70   :  { %1267 = vmatpush3.bf16.msra.mxu0 %v1264_v27  ;;  %1287 = vmatpush3.bf16.msra.mxu1 %v1284_v50  ;;  %v352_v27 = vld [vmem:[#allocation3 + $0x8] sm:$0xff]  ;;  %v359_v50 = vld [vmem:[#allocation3 + $0x40] sm:$0xff]  ;;  %v362_v60 = vld [vmem:[#allocation3 + $0x58] sm:$0xff] }
  0x71   :  { %1269 = vmatprep.subr.bf16.mxu0 %v1268_v32  ;;  %1289 = vmatprep.subr.bf16.mxu1 %v1288_v58  ;;  %v641_v10 = vld [vmem:[#allocation12 + $0x70] sm:$0xff]  ;;  %v642_v11 = vld [vmem:[#allocation12 + $0x78] sm:$0xff] }
  0x72   :  { %393 = vadd.xlane.f32.xlu1 %v139_v30  ;;  %391 = vadd.xlane.f32.xlu0 %v138_v31 }
  0x74   :  { %1271 = vmatpush3.bf16.msra.mxu0 %v1268_v32  ;;  %1291 = vmatpush3.bf16.msra.mxu1 %v1288_v58  ;;  %v356_v32 = vld [vmem:[#allocation3 + $0x28] sm:$0xff] }
  0x75   :  { %1273 = vmatprep.subr.bf16.mxu0 %v1272_v37  ;;  %1293 = vmatprep.subr.bf16.mxu1 %v1292_v0 }
  0x76   :  { %397 = vadd.xlane.f32.xlu1 %v141_v35  ;;  %395 = vadd.xlane.f32.xlu0 %v140_v36 }
  0x78   :  { %1275 = vmatpush3.bf16.msra.mxu0 %v1272_v37  ;;  %1295 = vmatpush3.bf16.msra.mxu1 %v1292_v0 }
  0x79   :  { %1277 = vmatprep.subr.bf16.mxu0 %v1276_v40 }
  0x7c   :  { %1279 = vmatpush3.bf16.msra.mxu0 %v1276_v40 }
  0x7d   :  { %1313 = vmatprep.subr.bf16.mxu0 %v1725_v49 }
  0x7f   :  { %1113 = vmatmul.mubr.f32.vlgmr.msra.gmra.mrb[0].mxu0 %v1710_v4  ;;  %v619_v4 = vld [vmem:[#allocation10 + $0x40] sm:$0xff] }
  0x80   :  { %1115 = vmatprep.mubr.f32.mxu0 %v1705_v1  ;;  %1315 = vmatpush3.bf16.msra.mxu0 %v1725_v49  ;;  %v1736_v1 = vpack.c.bf16 %v618_v63, %v617_v62 }
  0x81   :  { %1317 = vmatprep.subr.bf16.mxu0 %v1727_v54 }
  0x83   :  { %1116 = vmatmul.mubr.f32.gmra.mrb[2].mxu0 %v1708_v3  ;;  %v636_v3 = vld [vmem:[#allocation12 + $0x48] sm:$0xff] }
  0x84   :  { %1118 = vmatprep.mubr.f32.mxu0 %v1716_v8  ;;  %1319 = vmatpush3.bf16.msra.mxu0 %v1727_v54  ;;  %v1296_v6 = vpack.c.bf16 %v636_v3, %v635_v2  ;;  %v637_v8 = vld [vmem:[#allocation12 + $0x50] sm:$0xff] }
  0x85   :  { %1321 = vmatprep.subr.bf16.mxu0 %v1732_v59  ;;  %v1300_v12 = vpack.c.bf16 %v638_v9, %v637_v8 }
  0x86   :  { %1297 = vmatprep.subr.bf16.mxu1 %v1296_v6 }
  0x87   :  { %1119 = vmatmul.mubr.f32.gmra.mrb[4].mxu0 %v1714_v5  ;;  %v620_v5 = vld [vmem:[#allocation10 + $0x48] sm:$0xff]  ;;  %1299 = vmatpush3.bf16.msra.mxu1 %v1296_v6  ;;  %v363_v6 = vld [vmem:[#allocation3 + $0x60] sm:$0xff] }
  0x88   :  { %1121 = vmatprep.mubr.f32.mxu0 %v132_v16  ;;  %1323 = vmatpush3.bf16.msra.mxu0 %v1732_v59  ;;  %v1740_v7 = vpack.c.bf16 %v620_v5, %v619_v4  ;;  %v623_v16 = vld [vmem:[#allocation10 + $0x60] sm:$0xff]  ;;  %v364_v5 = vld [vmem:[#allocation3 + $0x68] sm:$0xff] }
  0x89   :  { %1325 = vmatprep.subr.bf16.mxu0 %v1736_v1  ;;  %1301 = vmatprep.subr.bf16.mxu1 %v1300_v12  ;;  %v1749_v19 = vpack.c.bf16 %v624_v18, %v623_v16  ;;  %v626_v18 = vld [vmem:[#allocation10 + $0x78] sm:$0xff] }
  0x8b   :  { %1122 = vmatmul.mubr.f32.gmra.mrb[6].mxu0 %v133_v15  ;;  %1303 = vmatpush3.bf16.msra.mxu1 %v1300_v12  ;;  %v640_v15 = vld [vmem:[#allocation12 + $0x68] sm:$0xff]  ;;  %v625_v12 = vld [vmem:[#allocation10 + $0x70] sm:$0xff] }
  0x8c   :  { %1124 = vmatprep.mubr.f32.mxu0 %v134_v21  ;;  %1327 = vmatpush3.bf16.msra.mxu0 %v1736_v1  ;;  %v1304_v17 = vpack.c.bf16 %v640_v15, %v639_v14  ;;  %v351_v21 = vld [vmem:[#allocation3] sm:$0xff] }
  0x8d   :  { %1329 = vmatprep.subr.bf16.mxu0 %v1740_v7 }
  0x8e   :  { %1305 = vmatprep.subr.bf16.mxu1 %v1304_v17 }
  0x8f   :  { %1125 = vmatmul.mubr.f32.gmra.mrb[8].mxu0 %v135_v20  ;;  %1307 = vmatpush3.bf16.msra.mxu1 %v1304_v17  ;;  %v353_v20 = vld [vmem:[#allocation3 + $0x10] sm:$0xff]  ;;  %v1308_v17 = vpack.c.bf16 %v642_v11, %v641_v10  ;;  %v602_v10 = vld [vmem:[#allocation9 + $0x38] sm:$0xff] }
  0x90   :  { %1127 = vmatprep.mubr.f32.mxu0 %v136_v26  ;;  %1331 = vmatpush3.bf16.msra.mxu0 %v1740_v7  ;;  %v354_v26 = vld [vmem:[#allocation3 + $0x18] sm:$0xff] }
  0x91   :  { %1333 = vmatprep.subr.bf16.mxu0 %v1744_v13  ;;  %1309 = vmatprep.subr.bf16.mxu1 %v1308_v17 }
  0x93   :  { %1128 = vmatmul.mubr.f32.gmra.mrb[10].mxu0 %v137_v25  ;;  %1311 = vmatpush3.bf16.msra.mxu1 %v1308_v17 }
  0x94   :  { %1130 = vmatprep.mubr.f32.mxu0 %v138_v31  ;;  %1335 = vmatpush3.bf16.msra.mxu0 %v1744_v13 }
  0x95   :  { %1337 = vmatprep.subr.bf16.mxu0 %v1749_v19  ;;  %1344 = vmatprep.subr.bf16.mxu1 %v1725_v49 }
  0x97   :  { %1131 = vmatmul.mubr.f32.gmra.mrb[12].mxu0 %v139_v30 }
  0x98   :  { %1133 = vmatprep.mubr.f32.mxu0 %v140_v36  ;;  %1339 = vmatpush3.bf16.msra.mxu0 %v1749_v19 }
  0x9b   :  { %1134 = vmatmul.mubr.f32.gmra.mrb[14].mxu0 %v141_v35 }
  0xe7   :  { %v372_v22 = vpop.xlane.xlu1 %371  ;;  %v368_v23 = vpop.xlane.xlu0 %367 }
  0xe8   :  { %v401_v24 = vadd.f32 %v372_v22, %v353_v20  ;;  %v399_v25 = vadd.f32 %v368_v23, %v351_v21  ;;  %v1765_v22 = vpack.c.bf16 %v626_v18, %v625_v12  ;;  %v366_v23 = vld [vmem:[#allocation3 + $0x78] sm:$0xff] }
  0xea   :  { %418 = vst.msk [vmem:[#allocation3 + $0x10] sm:$0xff] %vm109_vm0, %v401_v24  ;;  %416 = vst.msk [vmem:[#allocation3] sm:$0xff] %vm109_vm0, %v399_v25  ;;  %v365_v25 = vld [vmem:[#allocation3 + $0x70] sm:$0xff]  ;;  %1341 = vmatprep.subr.bf16.mxu0 %v1765_v22 }
  0xeb   :  { %v374_v28 = vpop.xlane.xlu1 %373  ;;  %v370_v29 = vpop.xlane.xlu0 %369  ;;  %1343 = vmatpush3.bf16.msra.mxu0 %v1765_v22 }
  0xec   :  { %v402_v30 = vadd.f32 %v374_v28, %v354_v26  ;;  %v400_v31 = vadd.f32 %v370_v29, %v352_v27 }
  0xee   :  { %419 = vst.msk [vmem:[#allocation3 + $0x18] sm:$0xff] %vm109_vm0, %v402_v30  ;;  %417 = vst.msk [vmem:[#allocation3 + $0x8] sm:$0xff] %vm109_vm0, %v400_v31 }
  0xef   :  { %v378_v34 = vpop.xlane.xlu1 %377  ;;  %v376_v35 = vpop.xlane.xlu0 %375 }
  0xf0   :  { %v404_v36 = vadd.f32 %v378_v34, %v356_v32  ;;  %v403_v37 = vadd.f32 %v376_v35, %v355_v33  ;;  %v595_v32 = vld [vmem:[#allocation9] sm:$0xff] }
  0xf1   :  { %v435_v40 = vld [vmem:[#allocation3] sm:$0xff]  ;;  %v437_v44 = vld [vmem:[#allocation3 + $0x10] sm:$0xff]  ;;  %1224 = vmatprep.mubr.f32.mxu0 %v595_v32 }
  0xf2   :  { %421 = vst.msk [vmem:[#allocation3 + $0x28] sm:$0xff] %vm109_vm0, %v404_v36  ;;  %420 = vst.msk [vmem:[#allocation3 + $0x20] sm:$0xff] %vm109_vm0, %v403_v37  ;;  %v451_v41 = vadd.f32 1.0, %v435_v40  ;;  %v453_v52 = vadd.f32 1.0, %v437_v44  ;;  %v596_v36 = vld [vmem:[#allocation9 + $0x8] sm:$0xff] }
  0xf3   :  { %v382_v42 = vpop.xlane.xlu1 %381  ;;  %v380_v43 = vpop.xlane.xlu0 %379  ;;  %1225 = vmatmul.mubr.f32.vlgmr.msra.gmra.mrb[16].mxu0 %v596_v36 }
  0xf4   :  { %v406_v45 = vadd.f32 %v382_v42, %v358_v38  ;;  %v405_v46 = vadd.f32 %v380_v43, %v357_v39  ;;  %1388 = vrcp.f32 %v451_v41 }
  0xf5   :  { %v436_v48 = vld [vmem:[#allocation3 + $0x8] sm:$0xff]  ;;  %v438_v56 = vld [vmem:[#allocation3 + $0x18] sm:$0xff] }
  0xf6   :  { %423 = vst.msk [vmem:[#allocation3 + $0x38] sm:$0xff] %vm109_vm0, %v406_v45  ;;  %422 = vst.msk [vmem:[#allocation3 + $0x30] sm:$0xff] %vm109_vm0, %v405_v46  ;;  %v452_v51 = vadd.f32 1.0, %v436_v48  ;;  %v454_v62 = vadd.f32 1.0, %v438_v56  ;;  %v597_v46 = vld [vmem:[#allocation9 + $0x10] sm:$0xff]  ;;  %v598_v48 = vld [vmem:[#allocation9 + $0x18] sm:$0xff] }
  0xf7   :  { %v386_v53 = vpop.xlane.xlu1 %385  ;;  %v384_v55 = vpop.xlane.xlu0 %383  ;;  %1227 = vmatprep.mubr.f32.mxu0 %v597_v46 }
  0xf8   :  { %v408_v57 = vadd.f32 %v386_v53, %v360_v47  ;;  %1390 = vrcp.f32 %v452_v51  ;;  %v407_v58 = vadd.f32 %v384_v55, %v359_v50  ;;  %1228 = vmatmul.mubr.f32.gmra.mrb[18].mxu0 %v598_v48 }
  0xf9   :  { %1392 = vrcp.f32 %v453_v52  ;;  %v439_v2 = vld [vmem:[#allocation3 + $0x20] sm:$0xff]  ;;  %v440_v16 = vld [vmem:[#allocation3 + $0x28] sm:$0xff] }
  0xfa   :  { %425 = vst.msk [vmem:[#allocation3 + $0x48] sm:$0xff] %vm109_vm0, %v408_v57  ;;  %424 = vst.msk [vmem:[#allocation3 + $0x40] sm:$0xff] %vm109_vm0, %v407_v58  ;;  %1394 = vrcp.f32 %v454_v62  ;;  %v455_v9 = vadd.f32 1.0, %v439_v2  ;;  %v456_v28 = vadd.f32 1.0, %v440_v16 }
  0xfb   :  { %v390_v63 = vpop.xlane.xlu1 %389  ;;  %v388_v0 = vpop.xlane.xlu0 %387 }
  0xfc   :  { %v410_v3 = vadd.f32 %v390_v63, %v362_v60  ;;  %v409_v4 = vadd.f32 %v388_v0, %v361_v61  ;;  %1396 = vrcp.f32 %v455_v9  ;;  %v599_v61 = vld [vmem:[#allocation9 + $0x20] sm:$0xff]  ;;  %v600_v63 = vld [vmem:[#allocation9 + $0x28] sm:$0xff] }
  0xfd   :  { %v441_v31 = vld [vmem:[#allocation3 + $0x30] sm:$0xff]  ;;  %v442_v40 = vld [vmem:[#allocation3 + $0x38] sm:$0xff]  ;;  %1230 = vmatprep.mubr.f32.mxu0 %v599_v61  ;;  %v603_v61 = vld [vmem:[#allocation9 + $0x40] sm:$0xff] }
  0xfe   :  { %v1389_v8 = vpop.eup %1388  ;;  %427 = vst.msk [vmem:[#allocation3 + $0x58] sm:$0xff] %vm109_vm0, %v410_v3  ;;  %426 = vst.msk [vmem:[#allocation3 + $0x50] sm:$0xff] %vm109_vm0, %v409_v4  ;;  %v457_v39 = vadd.f32 1.0, %v441_v31  ;;  %v458_v44 = vadd.f32 1.0, %v442_v40  ;;  %1231 = vmatmul.mubr.f32.gmra.mrb[20].mxu0 %v600_v63  ;;  %v605_v63 = vld [vmem:[#allocation9 + $0x50] sm:$0xff] }
  0xff   :  { %v394_v14 = vpop.xlane.xlu1 %393  ;;  %501 = vperm.xlu0 %1386, %v1389_v8   ;;  %v392_v15 = vpop.xlane.xlu0 %391  ;;  %v601_v8 = vld [vmem:[#allocation9 + $0x30] sm:$0xff] }
 0x100   :  { %v412_v20 = vadd.f32 %v394_v14, %v364_v5  ;;  %v411_v21 = vadd.f32 %v392_v15, %v363_v6  ;;  %1233 = vmatprep.mubr.f32.mxu0 %v601_v8 }
 0x101   :  { %v444_v24 = vld [vmem:[#allocation3 + $0x48] sm:$0xff]  ;;  %v443_v45 = vld [vmem:[#allocation3 + $0x40] sm:$0xff] }
 0x102   :  { %v1391_v26 = vpop.eup %1390  ;;  %429 = vst.msk [vmem:[#allocation3 + $0x68] sm:$0xff] %vm109_vm0, %v412_v20  ;;  %428 = vst.msk [vmem:[#allocation3 + $0x60] sm:$0xff] %vm109_vm0, %v411_v21  ;;  %v460_v27 = vadd.f32 1.0, %v444_v24  ;;  %v459_v53 = vadd.f32 1.0, %v443_v45  ;;  %1234 = vmatmul.mubr.f32.gmra.mrb[22].mxu0 %v602_v10 }
 0x103   :  { %v398_v29 = vpop.xlane.xlu1 %397  ;;  %506 = vperm.xlu1 %1387, %v1391_v26   ;;  %v396_v30 = vpop.xlane.xlu0 %395 }
 0x104   :  { %v1393_v33 = vpop.eup %1392  ;;  %v414_v34 = vadd.f32 %v398_v29, %v366_v23  ;;  %1398 = vrcp.f32 %v460_v27  ;;  %v413_v35 = vadd.f32 %v396_v30, %v365_v25 }
 0x105   :  { %v446_v37 = vld [vmem:[#allocation3 + $0x58] sm:$0xff]  ;;  %1400 = vrcp.f32 %v456_v28  ;;  %v1395_v41 = vpop.eup %1394  ;;  %v445_v55 = vld [vmem:[#allocation3 + $0x50] sm:$0xff] }
 0x106   :  { %431 = vst.msk [vmem:[#allocation3 + $0x78] sm:$0xff] %vm109_vm0, %v414_v34  ;;  %430 = vst.msk [vmem:[#allocation3 + $0x70] sm:$0xff] %vm109_vm0, %v413_v35  ;;  %v462_v38 = vadd.f32 1.0, %v446_v37  ;;  %v1397_v47 = vpop.eup %1396  ;;  %v461_v58 = vadd.f32 1.0, %v445_v55 }
 0x107   :  { %511 = vperm.xlu1 %1387, %v1393_v33  }
 0x108   :  { %1402 = vrcp.f32 %v462_v38 }
 0x109   :  { %v448_v42 = vld [vmem:[#allocation3 + $0x68] sm:$0xff]  ;;  %1404 = vrcp.f32 %v457_v39  ;;  %v447_v60 = vld [vmem:[#allocation3 + $0x60] sm:$0xff] }
 0x10a   :  { %v464_v43 = vadd.f32 1.0, %v448_v42  ;;  %v463_v2 = vadd.f32 1.0, %v447_v60 }
 0x10b   :  { %516 = vperm.xlu1 %1387, %v1395_v41  }
 0x10c   :  { %1406 = vrcp.f32 %v464_v43 }
 0x10d   :  { %v450_v50 = vld [vmem:[#allocation3 + $0x78] sm:$0xff]  ;;  %1408 = vrcp.f32 %v458_v44  ;;  %v449_v3 = vld [vmem:[#allocation3 + $0x70] sm:$0xff] }
 0x10e   :  { %v1399_v51 = vpop.eup %1398  ;;  %v466_v52 = vadd.f32 1.0, %v450_v50  ;;  %v465_v6 = vadd.f32 1.0, %v449_v3  ;;  %v609_v3 = vld [vmem:[#allocation9 + $0x70] sm:$0xff] }
 0x10f   :  { %521 = vperm.xlu1 %1387, %v1397_v47   ;;  %546 = vperm.xlu0 %1386, %v1399_v51   ;;  %v1401_v56 = vpop.eup %1400 }
 0x110   :  { %1410 = vrcp.f32 %v466_v52 }
 0x111   :  { %1412 = vrcp.f32 %v459_v53 }
 0x112   :  { %v1403_v57 = vpop.eup %1402  ;;  %1414 = vrcp.f32 %v461_v58 }
 0x113   :  { %526 = vperm.xlu1 %1387, %v1401_v56   ;;  %556 = vperm.xlu0 %1386, %v1403_v57   ;;  %v1405_v62 = vpop.eup %1404  ;;  %1416 = vrcp.f32 %v463_v2  ;;  %v608_v2 = vld [vmem:[#allocation9 + $0x68] sm:$0xff] }
 0x114   :  { %1418 = vrcp.f32 %v465_v6 }
 0x116   :  { %v1407_v0 = vpop.eup %1406 }
 0x117   :  { %531 = vperm.xlu1 %1387, %v1405_v62   ;;  %566 = vperm.xlu0 %1386, %v1407_v0   ;;  %v1409_v4 = vpop.eup %1408  ;;  %v604_v62 = vld [vmem:[#allocation9 + $0x48] sm:$0xff]  ;;  %v607_v0 = vld [vmem:[#allocation9 + $0x60] sm:$0xff] }
 0x11a   :  { %v1411_v5 = vpop.eup %1410 }
 0x11b   :  { %536 = vperm.xlu1 %1387, %v1409_v4   ;;  %576 = vperm.xlu0 %1386, %v1411_v5   ;;  %v1413_v9 = vpop.eup %1412  ;;  %v610_v4 = vld [vmem:[#allocation9 + $0x78] sm:$0xff] }
 0x11c   :  { %v1415_v11 = vpop.eup %1414 }
 0x11d   :  { %v1417_v12 = vpop.eup %1416 }
 0x11e   :  { %v1419_v14 = vpop.eup %1418 }
 0x11f   :  { %541 = vperm.xlu1 %1387, %v1413_v9  }
 0x123   :  { %551 = vperm.xlu1 %1387, %v1415_v11  }
 0x127   :  { %561 = vperm.xlu1 %1387, %v1417_v12  }
 0x12b   :  { %571 = vperm.xlu1 %1387, %v1419_v14  }
 0x152   :  { %v1114_v15 = vpop.f32.mrb[0].mxu0 }
 0x153   :  { %v240_v16 = vpop.f32.mrb[1].mxu0 }
 0x156   :  { %v1117_v17 = vpop.f32.mrb[2].mxu0 }
 0x157   :  { %v250_v18 = vpop.f32.mrb[3].mxu0 }
 0x15a   :  { %v1120_v20 = vpop.f32.mrb[4].mxu0 }
 0x15b   :  { %v260_v21 = vpop.f32.mrb[5].mxu0 }
 0x15e   :  { %v1123_v23 = vpop.f32.mrb[6].mxu0 }
 0x15f   :  { %v270_v24 = vpop.f32.mrb[7].mxu0 }
 0x162   :  { %v1126_v25 = vpop.f32.mrb[8].mxu0 }
 0x163   :  { %v280_v26 = vpop.f32.mrb[9].mxu0 }
 0x166   :  { %v1129_v27 = vpop.f32.mrb[10].mxu0 }
 0x167   :  { %v290_v28 = vpop.f32.mrb[11].mxu0 }
 0x16a   :  { %v1132_v29 = vpop.f32.mrb[12].mxu0 }
 0x16b   :  { %v300_v30 = vpop.f32.mrb[13].mxu0 }
 0x16e   :  { %v1135_v31 = vpop.f32.mrb[14].mxu0 }
 0x16f   :  { %v310_v32 = vpop.f32.mrb[15].mxu0 }
 0x17e   :  { %v502_v33 = vpop.permute.xlu0 %501 }
 0x17f   :  { %v579_v34 = vmul.f32 %v502_v33, %v240_v16 }
 0x181   :  { %1168 = vmatprep.mubr.f32.mxu1 %v579_v34 }
 0x182   :  { %v507_v35 = vpop.permute.xlu1 %506 }
 0x183   :  { %v580_v36 = vmul.f32 %v1114_v15, %v507_v35 }
 0x185   :  { %1169 = vmatmul.mubr.f32.vlgmr.msra.gmra.mrb[0].mxu1 %v580_v36 }
 0x186   :  { %v512_v37 = vpop.permute.xlu1 %511  ;;  %1352 = vmatpush3.bf16.msra.mxu1 %v1725_v49 }
 0x187   :  { %v581_v38 = vmul.f32 %v512_v37, %v250_v18  ;;  %1345 = vmatprep.subr.bf16.mxu1 %v1727_v54 }
 0x189   :  { %1171 = vmatprep.mubr.f32.mxu1 %v581_v38 }
 0x18a   :  { %v517_v39 = vpop.permute.xlu1 %516  ;;  %1353 = vmatpush3.bf16.msra.mxu1 %v1727_v54 }
 0x18b   :  { %v582_v40 = vmul.f32 %v1117_v17, %v517_v39  ;;  %1346 = vmatprep.subr.bf16.mxu1 %v1732_v59 }
 0x18d   :  { %1172 = vmatmul.mubr.f32.gmra.mrb[2].mxu1 %v582_v40 }
 0x18e   :  { %v522_v41 = vpop.permute.xlu1 %521  ;;  %1354 = vmatpush3.bf16.msra.mxu1 %v1732_v59  ;;  %v547_v54 = vpop.permute.xlu0 %546 }
 0x18f   :  { %v583_v42 = vmul.f32 %v522_v41, %v260_v21  ;;  %1347 = vmatprep.subr.bf16.mxu1 %v1736_v1 }
 0x191   :  { %1174 = vmatprep.mubr.f32.mxu1 %v583_v42 }
 0x192   :  { %v527_v43 = vpop.permute.xlu1 %526  ;;  %1355 = vmatpush3.bf16.msra.mxu1 %v1736_v1  ;;  %v557_v47 = vpop.permute.xlu0 %556 }
 0x193   :  { %v584_v49 = vmul.f32 %v1120_v20, %v527_v43  ;;  %1348 = vmatprep.subr.bf16.mxu1 %v1740_v7 }
 0x195   :  { %1175 = vmatmul.mubr.f32.gmra.mrb[4].mxu1 %v584_v49 }
 0x196   :  { %v532_v44 = vpop.permute.xlu1 %531  ;;  %1356 = vmatpush3.bf16.msra.mxu1 %v1740_v7  ;;  %v588_v7 = vmul.f32 %v1126_v25, %v547_v54  ;;  %v567_v51 = vpop.permute.xlu0 %566 }
 0x197   :  { %v585_v45 = vmul.f32 %v532_v44, %v270_v24  ;;  %1349 = vmatprep.subr.bf16.mxu1 %v1744_v13  ;;  %v592_v56 = vmul.f32 %v1132_v29, %v567_v51 }
 0x199   :  { %1177 = vmatprep.mubr.f32.mxu1 %v585_v45 }
 0x19a   :  { %v537_v59 = vpop.permute.xlu1 %536  ;;  %1357 = vmatpush3.bf16.msra.mxu1 %v1744_v13  ;;  %v590_v13 = vmul.f32 %v1129_v27, %v557_v47  ;;  %v577_v57 = vpop.permute.xlu0 %576 }
 0x19b   :  { %v586_v46 = vmul.f32 %v1123_v23, %v537_v59  ;;  %1350 = vmatprep.subr.bf16.mxu1 %v1749_v19  ;;  %v594_v60 = vmul.f32 %v1135_v31, %v577_v57 }
 0x19d   :  { %1178 = vmatmul.mubr.f32.gmra.mrb[6].mxu1 %v586_v46 }
 0x19e   :  { %v542_v1 = vpop.permute.xlu1 %541  ;;  %1358 = vmatpush3.bf16.msra.mxu1 %v1749_v19 }
 0x19f   :  { %v587_v48 = vmul.f32 %v542_v1, %v280_v26  ;;  %1351 = vmatprep.subr.bf16.mxu1 %v1765_v22 }
 0x1a1   :  { %1180 = vmatprep.mubr.f32.mxu1 %v587_v48 }
 0x1a2   :  { %v552_v50 = vpop.permute.xlu1 %551  ;;  %1181 = vmatmul.mubr.f32.gmra.mrb[8].mxu1 %v588_v7 }
 0x1a3   :  { %v589_v52 = vmul.f32 %v552_v50, %v290_v28  ;;  %1359 = vmatpush3.bf16.msra.mxu1 %v1765_v22  ;;  %v606_v22 = vld [vmem:[#allocation9 + $0x58] sm:$0xff] }
 0x1a5   :  { %1183 = vmatprep.mubr.f32.mxu1 %v589_v52 }
 0x1a6   :  { %v562_v53 = vpop.permute.xlu1 %561  ;;  %1184 = vmatmul.mubr.f32.gmra.mrb[10].mxu1 %v590_v13 }
 0x1a7   :  { %v591_v55 = vmul.f32 %v562_v53, %v300_v30 }
 0x1a9   :  { %1186 = vmatprep.mubr.f32.mxu1 %v591_v55 }
 0x1aa   :  { %v572_v19 = vpop.permute.xlu1 %571  ;;  %1187 = vmatmul.mubr.f32.gmra.mrb[12].mxu1 %v592_v56 }
 0x1ab   :  { %v593_v58 = vmul.f32 %v572_v19, %v310_v32 }
 0x1ad   :  { %1189 = vmatprep.mubr.f32.mxu1 %v593_v58 }
 0x1ae   :  { %1190 = vmatmul.mubr.f32.gmra.mrb[14].mxu1 %v594_v60 }
 0x1af   :  { %1236 = vmatprep.mubr.f32.mxu1 %v603_v61 }
 0x1b2   :  { %1237 = vmatmul.mubr.f32.vlgmr.msra.gmra.mrb[8].mxu1 %v604_v62 }
 0x1b3   :  { %1239 = vmatprep.mubr.f32.mxu1 %v605_v63 }
 0x1b6   :  { %1240 = vmatmul.mubr.f32.gmra.mrb[10].mxu1 %v606_v22 }
 0x1b7   :  { %1242 = vmatprep.mubr.f32.mxu1 %v607_v0 }
 0x1ba   :  { %1243 = vmatmul.mubr.f32.gmra.mrb[12].mxu1 %v608_v2 }
 0x1bb   :  { %1245 = vmatprep.mubr.f32.mxu1 %v609_v3 }
 0x1be   :  { %1246 = vmatmul.mubr.f32.gmra.mrb[14].mxu1 %v610_v4 }
 0x1c6   :  { %v1226_v5 = vpop.f32.mrb[16].mxu0 }
 0x1c7   :  { %v854_v6 = vpop.f32.mrb[17].mxu0 }
 0x1cb   :  { %v1229_v8 = vpop.f32.mrb[18].mxu0 }
 0x1cc   :  { %v864_v9 = vpop.f32.mrb[19].mxu0 }
 0x1d1   :  { %v1232_v10 = vpop.f32.mrb[20].mxu0 }
 0x1d2   :  { %v874_v11 = vpop.f32.mrb[21].mxu0 }
 0x1d5   :  { %v1235_v12 = vpop.f32.mrb[22].mxu0 }
 0x1d6   :  { %v884_v14 = vpop.f32.mrb[23].mxu0 }
 0x258   :  { %v1170_v15 = vpop.f32.mrb[0].mxu1 }
 0x259   :  { %v860_v16 = vadd.f32 %v1226_v5, %v1170_v15  ;;  %v709_v17 = vpop.f32.mrb[1].mxu1 }
 0x25a   :  { %v855_v18 = vadd.f32 %v854_v6, %v709_v17 }
 0x25b   :  { %v934_v20 = vmax.f32 %v860_v16, 0.0 }
 0x25c   :  { %v933_v21 = vmax.f32 %v855_v18, 0.0 }
 0x25d   :  { %950 = vst [vmem:[#allocation13 + $0x8] sm:$0xff] %v934_v20 }
 0x25e   :  { %949 = vst [vmem:[#allocation13] sm:$0xff] %v933_v21 }
 0x260   :  { %v1173_v23 = vpop.f32.mrb[2].mxu1 }
 0x261   :  { %v870_v24 = vadd.f32 %v1229_v8, %v1173_v23  ;;  %v719_v25 = vpop.f32.mrb[3].mxu1 }
 0x262   :  { %v865_v26 = vadd.f32 %v864_v9, %v719_v25 }
 0x263   :  { %v936_v27 = vmax.f32 %v870_v24, 0.0 }
 0x264   :  { %v935_v28 = vmax.f32 %v865_v26, 0.0 }
 0x265   :  { %952 = vst [vmem:[#allocation13 + $0x18] sm:$0xff] %v936_v27 }
 0x266   :  { %951 = vst [vmem:[#allocation13 + $0x10] sm:$0xff] %v935_v28 }
 0x268   :  { %v1176_v29 = vpop.f32.mrb[4].mxu1 }
 0x269   :  { %v880_v30 = vadd.f32 %v1232_v10, %v1176_v29  ;;  %v729_v31 = vpop.f32.mrb[5].mxu1 }
 0x26a   :  { %v875_v32 = vadd.f32 %v874_v11, %v729_v31 }
 0x26b   :  { %v938_v33 = vmax.f32 %v880_v30, 0.0 }
 0x26c   :  { %v937_v34 = vmax.f32 %v875_v32, 0.0 }
 0x26d   :  { %954 = vst [vmem:[#allocation13 + $0x28] sm:$0xff] %v938_v33 }
 0x26e   :  { %953 = vst [vmem:[#allocation13 + $0x20] sm:$0xff] %v937_v34 }
 0x270   :  { %v1179_v35 = vpop.f32.mrb[6].mxu1 }
 0x271   :  { %v890_v36 = vadd.f32 %v1235_v12, %v1179_v35  ;;  %v739_v37 = vpop.f32.mrb[7].mxu1 }
 0x272   :  { %v885_v38 = vadd.f32 %v884_v14, %v739_v37 }
 0x273   :  { %v940_v39 = vmax.f32 %v890_v36, 0.0 }
 0x274   :  { %v939_v40 = vmax.f32 %v885_v38, 0.0 }
 0x275   :  { %956 = vst [vmem:[#allocation13 + $0x38] sm:$0xff] %v940_v39 }
 0x276   :  { %955 = vst [vmem:[#allocation13 + $0x30] sm:$0xff] %v939_v40 }
 0x285   :  { %v1238_v41 = vpop.f32.mrb[8].mxu1 }
 0x286   :  { %v942_v42 = vmax.f32 %v1238_v41, 0.0  ;;  %v894_v43 = vpop.f32.mrb[9].mxu1 }
 0x287   :  { %v941_v49 = vmax.f32 %v894_v43, 0.0 }
 0x288   :  { %958 = vst [vmem:[#allocation13 + $0x48] sm:$0xff] %v942_v42 }
 0x289   :  { %957 = vst [vmem:[#allocation13 + $0x40] sm:$0xff] %v941_v49  ;;  %v1241_v44 = vpop.f32.mrb[10].mxu1 }
 0x28a   :  { %v944_v54 = vmax.f32 %v1241_v44, 0.0  ;;  %v904_v45 = vpop.f32.mrb[11].mxu1 }
 0x28b   :  { %v943_v59 = vmax.f32 %v904_v45, 0.0 }
 0x28c   :  { %960 = vst [vmem:[#allocation13 + $0x58] sm:$0xff] %v944_v54 }
 0x28d   :  { %959 = vst [vmem:[#allocation13 + $0x50] sm:$0xff] %v943_v59  ;;  %v1244_v46 = vpop.f32.mrb[12].mxu1 }
 0x28e   :  { %v946_v47 = vmax.f32 %v1244_v46, 0.0  ;;  %v914_v1 = vpop.f32.mrb[13].mxu1 }
 0x28f   :  { %v945_v48 = vmax.f32 %v914_v1, 0.0 }
 0x290   :  { %962 = vst [vmem:[#allocation13 + $0x68] sm:$0xff] %v946_v47 }
 0x291   :  { %961 = vst [vmem:[#allocation13 + $0x60] sm:$0xff] %v945_v48  ;;  %v1247_v7 = vpop.f32.mrb[14].mxu1 }
 0x292   :  { %v948_v50 = vmax.f32 %v1247_v7, 0.0  ;;  %v924_v51 = vpop.f32.mrb[15].mxu1 }
 0x293   :  { %v947_v52 = vmax.f32 %v924_v51, 0.0 }
 0x294   :  { %964 = vst [vmem:[#allocation13 + $0x78] sm:$0xff] %v948_v50 }
 0x295   :  { %963 = vst [vmem:[#allocation13 + $0x70] sm:$0xff] %v947_v52 }
 0x296   :  { %1541 = shalt.err (!%p1538_p2)
}
 0x297   :  { %s1542_s7 = scalar_lea.hbm %s1809_s5, 2048 }
 0x298   :  { %p1543_p3 = scmp.ne.s32.totalorder %s1809_s5, %s1542_s7  ;;  %p1546_p4 = scmp.lt.u32.totalorder %s1542_s7, %s1809_s5 }
 0x29a   :  { %p1548_p5 = pnand %p1546_p4, %p1543_p3 }
 0x29c   :  { %1551 = shalt.err (!%p1548_p5)
}
 0x29d   :  { %976 = dma.vmem_to_hbm [thread:$0]  %s971_s28, 2048, %s1809_s5, [#allocation6], %s1562_s30, %s1562_s30, %s1563_s6  }
 0x29e   :  { %1558 = dma.done.wait [#allocation6], 2048  }
 0x29f   :  { %1559 = vsyncadd [#allocation6], 4294965248 }
 0x2a0   :  { %980 = vsyncpa [#allocation5], 1 }
 0x2a1   :  { %981 = vsyncpa [#allocation8], 1 }
 0x2a2   :  { %982 = vsyncpa [#allocation11], 1 }
 0x2a3   :  { %983 = vsyncpa [#allocation6], 1 }

</bundles_post_ra>
